<compile_context>
chip_gen: v7x
topology: tpu7x:2x2x1
jax: 0.10.0
libtpu: 0.0.40
codegen_flags: <defaults>
</compile_context>

<pallas_src>
import jax
import jax.numpy as jnp
from jax.experimental import pallas as pl
from jax.experimental.pallas import tpu as pltpu


def _round_up(x: int, n: int) -> int:
    return ((x + n - 1) // n) * n


def ffn_kernel(x_ref, w1_ref, b1_ref, w2_ref, b2_ref, o_ref):
    # Hidden layer: [tm, K]bf16 @ [K, H]bf16 -> f32 acc, +bias, ReLU on VPU.
    h = jnp.dot(x_ref[...], w1_ref[...], preferred_element_type=jnp.float32)
    h = jnp.maximum(h + b1_ref[...], 0.0)
    # Output layer: [tm, H]bf16 @ [H, C]bf16 -> f32 acc, +bias. No softmax.
    out = jnp.dot(h.astype(jnp.bfloat16), w2_ref[...],
                  preferred_element_type=jnp.float32)
    o_ref[...] = (out + b2_ref[...]).astype(o_ref.dtype)


def _vmem_budget_bytes(tm: int, k: int, hidden: int, c: int) -> int:
    bf16, f32 = 2, 4
    x_bytes = 2 * tm * k * bf16                       # streamed x (double-buffered)
    out_bytes = 2 * tm * c * f32                      # streamed out (double-buffered)
    w_bytes = 2 * (k * hidden + hidden * c) * bf16    # resident weights (2 bufs)
    b_bytes = 2 * (hidden + c) * f32                  # resident biases (2 bufs)
    h_bytes = tm * hidden * f32                       # live intermediate
    return x_bytes + out_bytes + w_bytes + b_bytes + h_bytes


def ffn_forward(x, w1, b1, w2, b2, *, tm_max: int = 256):
    """x: [m, K], w1: [K, H], b1: [1, H], w2: [H, C], b2: [1, C] -> [m, C] (f32)."""
    m, k = x.shape
    hidden = w1.shape[1]
    num_classes = w2.shape[1]

    # bf16 operands for the MXU; accumulation stays f32 inside the kernel.
    x_bf = x.astype(jnp.bfloat16)
    w1_bf = w1.astype(jnp.bfloat16)
    w2_bf = w2.astype(jnp.bfloat16)
    b1_f = b1.astype(jnp.float32)
    b2_f = b2.astype(jnp.float32)

    # Balanced batch tiling (no wrapper padding; ragged last tile handled by Pallas).
    num_tiles = max(1, pl.cdiv(m, tm_max))
    if num_tiles <= 1:
        tm = m                                   # single full-extent tile (always legal)
    else:
        tm = min(_round_up(pl.cdiv(m, num_tiles), 16), tm_max)
    grid = (pl.cdiv(m, tm),)

    budget = _vmem_budget_bytes(tm, k, hidden, num_classes)
    vmem_limit = min(max(4 * budget, 32 * 1024 * 1024), 48 * 1024 * 1024)

    return pl.pallas_call(
        ffn_kernel,
        out_shape=jax.ShapeDtypeStruct((m, num_classes), jnp.float32),
        grid_spec=pltpu.PrefetchScalarGridSpec(
            num_scalar_prefetch=0,
            grid=grid,
            in_specs=[
                # x streams through the grid (auto double-buffered DMA).
                pl.BlockSpec((tm, k), lambda i: (i, 0)),
                # Weights / biases: constant index_map -> VMEM-resident.
                pl.BlockSpec((k, hidden), lambda i: (0, 0)),
                pl.BlockSpec((1, hidden), lambda i: (0, 0)),
                pl.BlockSpec((hidden, num_classes), lambda i: (0, 0)),
                pl.BlockSpec((1, num_classes), lambda i: (0, 0)),
            ],
            out_specs=pl.BlockSpec((tm, num_classes), lambda i: (i, 0)),
        ),
        compiler_params=pltpu.CompilerParams(
            dimension_semantics=("parallel",),
            vmem_limit_bytes=vmem_limit,
        ),
    )(x_bf, w1_bf, b1_f, w2_bf, b2_f)


def init_params(key, input_size, hidden_size, num_classes):
    # Deterministic init mimicking nn.Linear's uniform(-1/sqrt(fan_in), 1/sqrt(fan_in)).
    # Weights are stored pre-transposed vs PyTorch so the kernel does x @ w directly.
    k1, k2, k3, k4 = jax.random.split(key, 4)
    lim1 = 1.0 / jnp.sqrt(input_size)
    lim2 = 1.0 / jnp.sqrt(hidden_size)
    w1 = jax.random.uniform(k1, (input_size, hidden_size), jnp.float32, -lim1, lim1)
    b1 = jax.random.uniform(k2, (1, hidden_size), jnp.float32, -lim1, lim1)
    w2 = jax.random.uniform(k3, (hidden_size, num_classes), jnp.float32, -lim2, lim2)
    b2 = jax.random.uniform(k4, (1, num_classes), jnp.float32, -lim2, lim2)
    return w1, b1, w2, b2


def _reference_bf16(x, w1, b1, w2, b2):
    # Same math as the kernel: bf16 operands, f32 accumulation/bias.
    xb, w1b, w2b = (t.astype(jnp.bfloat16) for t in (x, w1, w2))
    h = jnp.maximum(jnp.dot(xb, w1b, preferred_element_type=jnp.float32) + b1, 0.0)
    return jnp.dot(h.astype(jnp.bfloat16), w2b, preferred_element_type=jnp.float32) + b2


if __name__ == "__main__":
    input_size, hidden_size, num_classes = 32, 64, 16
    m = 8

    key = jax.random.PRNGKey(0)
    kx, kp = jax.random.split(key)
    x = jax.random.normal(kx, (m, input_size), jnp.float32)
    w1, b1, w2, b2 = init_params(kp, input_size, hidden_size, num_classes)

    y = ffn_forward(x, w1, b1, w2, b2)
    jax.block_until_ready(y)
    assert y.shape == (m, num_classes)

    # Correctness: tight check against a bf16-matched reference, loose check vs f32.
    ref_bf = _reference_bf16(x, w1, b1, w2, b2)
    ref_f32 = jnp.maximum(x @ w1 + b1, 0.0) @ w2 + b2
    assert jnp.allclose(y, ref_bf, atol=2e-3, rtol=2e-3)
    assert jnp.allclose(y, ref_f32, atol=1e-1, rtol=1e-1)

    # Also exercise the multi-tile, ragged-grid path (m not a multiple of tm).
    m_big = 1000
    x_big = jax.random.normal(jax.random.PRNGKey(1), (m_big, input_size), jnp.float32)
    y_big = ffn_forward(x_big, w1, b1, w2, b2)
    jax.block_until_ready(y_big)
    assert y_big.shape == (m_big, num_classes)
    ref_big_bf = _reference_bf16(x_big, w1, b1, w2, b2)
    ref_big_f32 = jnp.maximum(x_big @ w1 + b1, 0.0) @ w2 + b2
    assert jnp.allclose(y_big, ref_big_bf, atol=2e-3, rtol=2e-3)
    assert jnp.allclose(y_big, ref_big_f32, atol=1e-1, rtol=1e-1)

    print("KERNEL_OK")
</pallas_src>

<mosaic_0001>
module attributes {stable_mosaic.version = 11 : i64} {
  func.func @ffn_kernel(%arg0: i32, %arg1: memref<8x32xbf16, #tpu.memory_space<vmem>>, %arg2: memref<32x64xbf16, #tpu.memory_space<vmem>>, %arg3: memref<1x64xf32, #tpu.memory_space<vmem>>, %arg4: memref<64x16xbf16, #tpu.memory_space<vmem>>, %arg5: memref<1x16xf32, #tpu.memory_space<vmem>>, %arg6: memref<8x16xf32, #tpu.memory_space<vmem>>) attributes {dimension_semantics = [#tpu.dimension_semantics<parallel>], iteration_bounds = array<i64: 1>, scalar_prefetch = 0 : i64, scratch_operands = 0 : i64, tpu.core_type = #tpu.core_type<tc>, window_params = [{transform_indices = @transform_0, window_bounds = array<i64: 8, 32>}, {pipeline_mode = #tpu.pipeline_mode<synchronous>, transform_indices = @transform_1, window_bounds = array<i64: 32, 64>}, {pipeline_mode = #tpu.pipeline_mode<synchronous>, transform_indices = @transform_2, window_bounds = array<i64: 1, 64>}, {pipeline_mode = #tpu.pipeline_mode<synchronous>, transform_indices = @transform_3, window_bounds = array<i64: 64, 16>}, {pipeline_mode = #tpu.pipeline_mode<synchronous>, transform_indices = @transform_4, window_bounds = array<i64: 1, 16>}, {transform_indices = @transform_5, window_bounds = array<i64: 8, 16>}]} {
    %c0 = arith.constant 0 : index
    %c0_0 = arith.constant 0 : index
    %0 = vector.load %arg1[%c0, %c0_0] : memref<8x32xbf16, #tpu.memory_space<vmem>>, vector<8x32xbf16>
    %c0_1 = arith.constant 0 : index
    %c0_2 = arith.constant 0 : index
    %1 = vector.load %arg2[%c0_1, %c0_2] : memref<32x64xbf16, #tpu.memory_space<vmem>>, vector<32x64xbf16>
    %cst = arith.constant dense<0.000000e+00> : vector<8x64xf32>
    %2 = tpu.matmul %0, %1, %cst {dimension_numbers = #tpu.dot_dimension_numbers<[1], [0], [0], [1], [0, 0, 1, 1], [], []>} : vector<8x32xbf16>, vector<32x64xbf16>, vector<8x64xf32> -> vector<8x64xf32>
    %c0_3 = arith.constant 0 : index
    %c0_4 = arith.constant 0 : index
    %3 = vector.load %arg3[%c0_3, %c0_4] : memref<1x64xf32, #tpu.memory_space<vmem>>, vector<1x64xf32>
    %4 = vector.broadcast %3 : vector<1x64xf32> to vector<8x64xf32>
    %5 = arith.addf %2, %4 : vector<8x64xf32>
    %cst_5 = arith.constant 0.000000e+00 : f32
    %6 = vector.broadcast %cst_5 : f32 to vector<8x64xf32>
    %7 = arith.maximumf %5, %6 : vector<8x64xf32>
    %8 = arith.truncf %7 : vector<8x64xf32> to vector<8x64xbf16>
    %c0_6 = arith.constant 0 : index
    %c0_7 = arith.constant 0 : index
    %9 = vector.load %arg4[%c0_6, %c0_7] : memref<64x16xbf16, #tpu.memory_space<vmem>>, vector<64x16xbf16>
    %cst_8 = arith.constant dense<0.000000e+00> : vector<8x16xf32>
    %10 = tpu.matmul %8, %9, %cst_8 {dimension_numbers = #tpu.dot_dimension_numbers<[1], [0], [0], [1], [0, 0, 1, 1], [], []>} : vector<8x64xbf16>, vector<64x16xbf16>, vector<8x16xf32> -> vector<8x16xf32>
    %c0_9 = arith.constant 0 : index
    %c0_10 = arith.constant 0 : index
    %11 = vector.load %arg5[%c0_9, %c0_10] : memref<1x16xf32, #tpu.memory_space<vmem>>, vector<1x16xf32>
    %12 = vector.broadcast %11 : vector<1x16xf32> to vector<8x16xf32>
    %13 = arith.addf %10, %12 : vector<8x16xf32>
    %c0_11 = arith.constant 0 : index
    %c0_12 = arith.constant 0 : index
    %14 = vector.load %arg6[%c0_11, %c0_12] : memref<8x16xf32, #tpu.memory_space<vmem>>, vector<8x16xf32>
    tpu.vector_store %arg6[%c0_11, %c0_12], %13 {strides = array<i32>} : memref<8x16xf32, #tpu.memory_space<vmem>>, vector<8x16xf32>,
    return
  }
  func.func @transform_0(%arg0: i32) -> (i32, i32) {
    %c0_i32 = arith.constant 0 : i32
    %c0_i32_0 = arith.constant 0 : i32
    return %arg0, %c0_i32 : i32, i32
  }
  func.func @transform_1(%arg0: i32) -> (i32, i32) {
    %c0_i32 = arith.constant 0 : i32
    %c0_i32_0 = arith.constant 0 : i32
    %c0_i32_1 = arith.constant 0 : i32
    return %c0_i32, %c0_i32_0 : i32, i32
  }
  func.func @transform_2(%arg0: i32) -> (i32, i32) {
    %c0_i32 = arith.constant 0 : i32
    %c0_i32_0 = arith.constant 0 : i32
    %c0_i32_1 = arith.constant 0 : i32
    return %c0_i32, %c0_i32_0 : i32, i32
  }
  func.func @transform_3(%arg0: i32) -> (i32, i32) {
    %c0_i32 = arith.constant 0 : i32
    %c0_i32_0 = arith.constant 0 : i32
    %c0_i32_1 = arith.constant 0 : i32
    return %c0_i32, %c0_i32_0 : i32, i32
  }
  func.func @transform_4(%arg0: i32) -> (i32, i32) {
    %c0_i32 = arith.constant 0 : i32
    %c0_i32_0 = arith.constant 0 : i32
    %c0_i32_1 = arith.constant 0 : i32
    return %c0_i32, %c0_i32_0 : i32, i32
  }
  func.func @transform_5(%arg0: i32) -> (i32, i32) {
    %c0_i32 = arith.constant 0 : i32
    %c0_i32_0 = arith.constant 0 : i32
    return %arg0, %c0_i32 : i32, i32
  }
}

</mosaic_0001>

<bundles_post_ra>
// kernel: tpu_custom_call.1
= control target key start
LH: loop header
LB: loop body
LE: loop exit
PB: predicated region body
PF: predicated region fallthrough
CT: control target
= control target key end

     0   :  { %v262_v1 = vmov 0.0   ;;  %vm263_vm0 = vmmov 0   ;;  %vm46_vm1 = vcmask 261120   ;;  %s334_s0 = inlined_call_operand.vmem [shape: bf16[8,32], index: 0, kind: input, shape index: {}]   ;;  %s335_s1 = inlined_call_operand.vmem [shape: bf16[32,64], index: 1, kind: input, shape index: {}]   ;;  %s336_s2 = inlined_call_operand.vmem [shape: f32[1,64], index: 2, kind: input, shape index: {}]   ;;  %s337_s3 = inlined_call_operand.vmem [shape: bf16[64,16], index: 3, kind: input, shape index: {}]   ;;  %s338_s4 = inlined_call_operand.vmem [shape: f32[1,16], index: 4, kind: input, shape index: {}]   ;;  %s339_s5 = inlined_call_operand.hbm [shape: f32[8,16], index: 5, kind: output, shape index: {}]  }
   0x1   :  { %v232_v0 = vld [vmem:[%s335_s1] sm:$0xff]   ;;  %209 = vmatprep.subr.bf16.mxu0 %v262_v1  ;;  %217 = vmatprep.subr.bf16.mxu1 %v262_v1  ;;  %v233_v2 = vld [vmem:[%s335_s1 + $0x8] sm:$0xff]  }
   0x2   :  { %210 = vmatpush3.bf16.msra.mxu0 %v232_v0  ;;  %213 = vmatprep.mubr.msk.bf16.mxu0 %vm263_vm0, %v262_v1  ;;  %v234_v3 = vld [vmem:[%s337_s3] sm:$0xff]   ;;  %v235_v4 = vld [vmem:[%s337_s3 + $0x8] sm:$0xff]  }
   0x3   :  { %211 = vmatprep.subr.bf16.mxu0 %v262_v1  ;;  %225 = vmatprep.mubr.msk.bf16.mxu1 %vm263_vm0, %v262_v1  ;;  %v22_v5 = vld [vmem:[%s334_s0] sm:$0xf] }
   0x4   :  { %218 = vmatpush3.bf16.msra.mxu1 %v234_v3 }
   0x5   :  { %219 = vmatprep.subr.bf16.mxu1 %v262_v1 }
   0x6   :  { %212 = vmatpush3.bf16.msra.mxu0 %v233_v2 }
   0x7   :  { %10 = vsyncpa [#allocation3], 0  ;;  %v236_v6 = vld [vmem:[%s337_s3 + $0x10] sm:$0xff]   ;;  %v237_v7 = vld [vmem:[%s337_s3 + $0x18] sm:$0xff]   ;;  %vm131_vm2 = vcmask 523264   ;;  %s264_s9 = smov [#allocation2]  }
   0x8   :  { %220 = vmatpush3.bf16.msra.mxu1 %v235_v4  ;;  %v191_v8 = vld [vmem:[%s336_s2] ss:$0 sm:$0xff]  ;;  %s183_s3 = sshll.u32 %s264_s9, 4  ;;  %vm175_vm3 = vcmask 130048   ;;  %s184_s3 = int_to_ptr.vmem [resolvable:$true] %s183_s3 }
   0x9   :  { %214 = vmatmul.mubr.msk.bf16.vlgmr.msra.gmra.mrb[0].mxu0 %vm46_vm1, %v22_v5  ;;  %221 = vmatprep.subr.bf16.mxu1 %v262_v1  ;;  %v195_v16 = vld [vmem:[%s338_s4] ss:$0 sm:$0xff]  ;;  %s238_s2 = scalar_lea.vmem %s184_s3, 128  ;;  %p243_p1 = scmp.lt.s32.totalorder %s184_s3, %s184_s3 }
   0xa   :  { %p239_p0 = scmp.ne.s32.totalorder %s184_s3, %s238_s2  ;;  %p244_p2 = scmp.lt.s32.totalorder %s238_s2, %s238_s2 }
   0xc   :  { %222 = vmatpush3.bf16.msra.mxu1 %v236_v6  ;;  %p245_p3 = por %p244_p2, %p243_p1 }
   0xd   :  { %223 = vmatprep.subr.bf16.mxu1 %v262_v1 }
   0xe   :  { %p246_p4 = pnand %p245_p3, %p239_p0 }
  0x10   :  { %224 = vmatpush3.bf16.msra.mxu1 %v237_v7 }
  0xdc   :  { %v84_v9 = vpop.f32.mrb[0].mxu0 }
  0xdd   :  { %v85_v10 = vadd.f32 %v191_v8, %v84_v9  ;;  %v215_v11 = vpop.f32.mrb[1].mxu0 }
  0xde   :  { %v87_v12 = vpop.f32.mrb[2].mxu0 }
  0xdf   :  { %v90_v13 = vmax.f32 %v85_v10, 0.0  ;;  %v216_v14 = vpop.f32.mrb[3].mxu0 }
  0xe1   :  { %v91_v15 = vpack.c.bf16 %v90_v13, %v90_v13 }
  0xe3   :  { %226 = vmatmul.mubr.msk.bf16.vlgmr.msra.gmra.mrb[0].mxu1 %vm131_vm2, %v91_v15 }
 0x1b6   :  { %v169_v17 = vpop.f32.mrb[0].mxu1 }
 0x1b7   :  { %v170_v18 = vadd.f32 %v195_v16, %v169_v17  ;;  %v227_v19 = vpop.f32.mrb[1].mxu1 }
 0x1b8   :  { %v172_v20 = vpop.f32.mrb[2].mxu1 }
 0x1b9   :  { %v228_v21 = vpop.f32.mrb[3].mxu1  ;;  %176 = vst.msk [vmem:[#allocation2] sm:$0xff] %vm175_vm3, %v170_v18 }
 0x1ba   :  { %249 = shalt.err (!%p246_p4)
}
 0x1bb   :  { %s250_s4 = scalar_lea.hbm %s339_s5, 128 }
 0x1bc   :  { %p251_p5 = scmp.ne.s32.totalorder %s339_s5, %s250_s4  ;;  %p254_p6 = scmp.lt.u32.totalorder %s250_s4, %s339_s5 }
 0x1be   :  { %p256_p7 = pnand %p254_p6, %p251_p5 }
 0x1c0   :  { %259 = shalt.err (!%p256_p7)
}
 0x1c1   :  { %186 = dma.vmem_to_hbm [thread:$0]  %s184_s3, 128, %s339_s5, [#allocation3]  }
 0x1c2   :  { %260 = dma.done.wait [#allocation3], 128  }
 0x1c3   :  { %261 = vsyncadd [#allocation3], 4294967168 }
 0x1c4   :  { %190 = vsyncpa [#allocation3], 1 }

</bundles_post_ra>
